<compile_context>
chip_gen: v7x
topology: tpu7x:2x2x1
jax: 0.10.0
libtpu: 0.0.40
codegen_flags: <defaults>
</compile_context>

<pallas_src>
import functools

import jax
import jax.numpy as jnp
from jax.experimental import pallas as pl
from jax.experimental.pallas import tpu as pltpu


def _cdiv(a, b):
    return (a + b - 1) // b


def _round_up(a, m):
    return ((a + m - 1) // m) * m


@functools.lru_cache(maxsize=None)
def _roll_moves_to_higher_lanes() -> bool:
    """One-time calibration of pltpu.roll's rotation convention.

    Returns True when pltpu.roll matches jnp.roll, i.e.
    roll(x, s, axis=-1)[..., l] == x[..., (l - s) % n]  (elements move toward
    higher lane indices).  Probing once keeps the main kernel correct across
    Mosaic versions regardless of the rotate convention; the probe is tiny and
    cached for the process lifetime.
    """
    def probe_kernel(x_ref, o_ref):
        o_ref[...] = pltpu.roll(x_ref[...], 1, axis=1)

    with jax.ensure_compile_time_eval():
        x = jax.lax.broadcasted_iota(jnp.float32, (8, 128), 1)
        out = pl.pallas_call(
            probe_kernel,
            out_shape=jax.ShapeDtypeStruct((8, 128), jnp.float32),
        )(x)
        v = float(out[0, 0])
    if v == 127.0:
        return True
    if v == 1.0:
        return False
    raise RuntimeError(f"unexpected pltpu.roll probe value: {v}")


def _corner_to_center_kernel(x_ref, o_ref, *, shift_from_next, shift_from_prev):
    # x_ref / o_ref: (tile_rows, C) float tile of the flat interleaved buffer.
    # Lanes l % 4 == 0,1,2,3 hold xmin, ymin, xmax, ymax of one box (C % 4 == 0,
    # so boxes never straddle rows, and the roll wrap-around lanes are never
    # selected).
    x = x_ref[...]
    # lane l <- lane l+2: on the (xmin, ymin) lanes this is the matching (xmax, ymax).
    from_next = pltpu.roll(x, shift_from_next, axis=1)
    # lane l <- lane l-2: on the (xmax, ymax) lanes this is the matching (xmin, ymin).
    from_prev = pltpu.roll(x, shift_from_prev, axis=1)

    lane = jax.lax.broadcasted_iota(jnp.int32, x.shape, 1)
    is_min_lane = (lane & 3) < 2          # lanes holding xmin / ymin

    wh = from_next - x                    # width / height (exact `xmax - xmin` order)
    centers = (x + wh) * 0.5              # (xmin + width) / 2 -- keep reference op order
    # Single unmasked full-tile store: centers on the min lanes, width/height on
    # the max lanes (computed there as x - from_prev, same subtraction order).
    o_ref[...] = jnp.where(is_min_lane, centers, x - from_prev)


_LANE_WIDTH_CANDIDATES = (2048, 1024, 512, 256, 128)
_FALLBACK_LANE_WIDTH = 512


def bbox_corner_to_center(x, axis=-1, *, target_block_bytes=2 * 1024 * 1024):
    """Pallas TPU implementation of BBoxCornerToCenter.forward.

    x: array with x.shape[axis] == 4 holding (xmin, ymin, xmax, ymax).
    Returns (x_center, y_center, width, height), each with a size-1 `axis`,
    exactly like the PyTorch module.

    target_block_bytes: per-block VMEM budget.  The 2 MiB default keeps the
    double-buffered in+out footprint (~8 MiB) under v5e's 16 MiB scoped-VMEM
    default; it can be raised to 4-8 MiB on v6e / v7x.
    """
    axis = axis % x.ndim
    if x.shape[axis] != 4:
        raise ValueError(f"expected size-4 coordinate axis, got {x.shape[axis]}")
    if not jnp.issubdtype(x.dtype, jnp.floating):
        # TODO(synk): torch keeps integer width/height for integer boxes; this
        # kernel returns a single float32 dtype for all four outputs instead.
        x = x.astype(jnp.float32)

    # Default axis=-1 uses the native contiguous layout (NO transpose).  Only a
    # non-minor coordinate axis pays a single moveaxis.
    moved = axis != x.ndim - 1
    xi = jnp.moveaxis(x, axis, -1) if moved else x
    lead_shape = xi.shape[:-1]

    total = xi.size
    dtype_bytes = xi.dtype.itemsize

    # Lane width: multiple of 128 (lane-dense, unmasked stores; 4 consecutive
    # lanes = one box).  Prefer a width that divides `total` exactly so no flat
    # pad is needed; otherwise pad the tail by < C elements.  The grid itself
    # never pads: it uses cdiv and Pallas clips the partial last block.
    C = next((c for c in _LANE_WIDTH_CANDIDATES if total % c == 0),
             _FALLBACK_LANE_WIDTH)
    rows = _cdiv(total, C)
    padded_total = rows * C

    flat = xi.reshape(-1)
    if padded_total != total:
        flat = jnp.pad(flat, (0, padded_total - total))
    slab = flat.reshape(rows, C)

    # Row tiling: 8-sublane-dense blocks within the VMEM budget; force >=2 grid
    # steps for anything non-trivial so the "parallel" axis can shard across
    # v7x's two TensorCores.
    bytes_per_row = C * dtype_bytes
    budget_rows = max(8, (target_block_bytes // bytes_per_row) // 8 * 8)
    if rows >= 16:
        tile_rows = min(budget_rows, _round_up(_cdiv(rows, 2), 8))
    else:
        tile_rows = rows                      # single block == full array dims
    grid = (_cdiv(rows, tile_rows),)

    if _roll_moves_to_higher_lanes():
        shift_from_next, shift_from_prev = C - 2, 2     # jnp.roll convention
    else:
        shift_from_next, shift_from_prev = 2, C - 2

    kernel = functools.partial(
        _corner_to_center_kernel,
        shift_from_next=shift_from_next,
        shift_from_prev=shift_from_prev,
    )

    out = pl.pallas_call(
        kernel,
        out_shape=jax.ShapeDtypeStruct((rows, C), xi.dtype),
        grid_spec=pltpu.PrefetchScalarGridSpec(
            num_scalar_prefetch=0,
            grid=grid,
            in_specs=[pl.BlockSpec((tile_rows, C), lambda i: (i, 0))],
            out_specs=pl.BlockSpec((tile_rows, C), lambda i: (i, 0)),
        ),
        compiler_params=pltpu.CompilerParams(
            dimension_semantics=("parallel",)),
        cost_estimate=pl.CostEstimate(
            flops=3 * padded_total,
            transcendentals=0,
            bytes_accessed=2 * padded_total * dtype_bytes),
    )(slab)

    out_flat = out.reshape(-1)
    if padded_total != total:
        out_flat = out_flat[:total]
    out_boxes = out_flat.reshape(lead_shape + (4,))   # interleaved (xc, yc, w, h)

    def pick(c):
        o = out_boxes[..., c:c + 1]                   # (..., 1) along the minor axis
        return jnp.moveaxis(o, -1, axis) if moved else o

    return pick(0), pick(1), pick(2), pick(3)


def _reference(x, axis=-1):
    # Pure-JAX mirror of the PyTorch forward (same formulas, same op order).
    xmin, ymin, xmax, ymax = jnp.split(x, 4, axis=axis)
    width = xmax - xmin
    height = ymax - ymin
    x_center = (xmin + width) / 2.0
    y_center = (ymin + height) / 2.0
    return x_center, y_center, width, height


if __name__ == "__main__":
    key = jax.random.PRNGKey(0)
    k1, k2, k3, k4 = jax.random.split(key, 4)

    def check(x, axis=-1, tol=1e-6):
        got = jax.block_until_ready(bbox_corner_to_center(x, axis=axis))
        want = _reference(x, axis=axis)
        for g, w in zip(got, want):
            assert g.shape == w.shape, (g.shape, w.shape)
            assert jnp.allclose(g, w, atol=tol, rtol=tol), \
                float(jnp.max(jnp.abs(g - w)))

    # 1) Small batch of corner-format boxes, default axis=-1
    #    (single block, padded flat tail).
    B, N = 2, 8
    xy = jax.random.uniform(k1, (B, N, 2), jnp.float32, minval=0.0, maxval=0.5)
    wh = jax.random.uniform(k2, (B, N, 2), jnp.float32, minval=0.05, maxval=0.5)
    boxes = jnp.concatenate([xy, xy + wh], axis=-1)   # (B, N, 4): xmin, ymin, xmax, ymax
    check(boxes)

    # 2) Non-multiple size: padded flat tail + 2 grid steps with a clipped
    #    partial last block.
    check(jax.random.uniform(k3, (5, 1000, 4), jnp.float32))

    # 3) Pad-free path: total divisible by 2048 -> wide lanes, 2 even grid steps.
    check(jax.random.uniform(k4, (4, 4096, 4), jnp.float32))

    # 4) Non-default coordinate axis (falls back to a single moveaxis).
    check(jax.random.uniform(k1, (4, 6, 3), jnp.float32), axis=0)

    print("KERNEL_OK")
</pallas_src>

<mosaic_0001>
module attributes {stable_mosaic.version = 11 : i64} {
  func.func @probe_kernel(%arg0: memref<8x128xf32, #tpu.memory_space<vmem>>, %arg1: memref<8x128xf32, #tpu.memory_space<vmem>>) attributes {dimension_semantics = [], scalar_prefetch = 0 : i64, scratch_operands = 0 : i64, tpu.core_type = #tpu.core_type<tc>} {
    %c0 = arith.constant 0 : index
    %c0_0 = arith.constant 0 : index
    %0 = vector.load %arg0[%c0, %c0_0] : memref<8x128xf32, #tpu.memory_space<vmem>>, vector<8x128xf32>
    %c1_i32 = arith.constant 1 : i32
    %1 = tpu.dynamic_rotate %0 by %c1_i32 dim 1 : vector<8x128xf32>, i32 -> vector<8x128xf32>
    %c0_1 = arith.constant 0 : index
    %c0_2 = arith.constant 0 : index
    %2 = vector.load %arg1[%c0_1, %c0_2] : memref<8x128xf32, #tpu.memory_space<vmem>>, vector<8x128xf32>
    tpu.vector_store %arg1[%c0_1, %c0_2], %1 {strides = array<i32>} : memref<8x128xf32, #tpu.memory_space<vmem>>, vector<8x128xf32>,
    return
  }
}

</mosaic_0001>

<bundles_post_ra>
// kernel: tpu_custom_call.1
= control target key start
LH: loop header
LB: loop body
LE: loop exit
PB: predicated region body
PF: predicated region fallthrough
CT: control target
= control target key end

     0   :  { %6 = vsyncpa [#allocation3], 0  ;;  %s128_s0 = inlined_call_operand.hbm [shape: f32[8,128], index: 0, kind: input, shape index: {}]   ;;  %s129_s1 = inlined_call_operand.hbm [shape: f32[8,128], index: 1, kind: output, shape index: {}]  }
   0x1   :  { %7 = vsyncpa [#allocation4], 0  ;;  %s91_s6 = smov [#allocation2]   ;;  %s43_s10 = scalar_lea.hbm %s128_s0, 128 }
   0x2   :  { %s14_s7 = sshll.u32 %s91_s6, 4  ;;  %p44_p0 = scmp.ne.s32.totalorder %s128_s0, %s43_s10  ;;  %s15_s7 = int_to_ptr.vmem [resolvable:$true] %s14_s7 }
   0x3   :  { %p47_p1 = scmp.lt.u32.totalorder %s43_s10, %s128_s0 }
   0x5   :  { %p49_p2 = pnand %p47_p1, %p44_p0 }
   0x7   :  { %52 = shalt.err (!%p49_p2)
}
   0x8   :  { %s53_s15 = scalar_lea.vmem %s15_s7, 128  ;;  %p58_p4 = scmp.lt.s32.totalorder %s15_s7, %s15_s7 }
   0x9   :  { %p54_p3 = scmp.ne.s32.totalorder %s15_s7, %s53_s15  ;;  %p59_p5 = scmp.lt.s32.totalorder %s53_s15, %s53_s15 }
   0xb   :  { %p60_p6 = por %p59_p5, %p58_p4 }
   0xd   :  { %p61_p7 = pnand %p60_p6, %p54_p3 }
   0xf   :  { %64 = shalt.err (!%p61_p7)
}
  0x10   :  { %17 = dma.hbm_to_vmem [thread:$0]  %s128_s0, 128, %s15_s7, [#allocation3]  }
  0x11   :  { %87 = dma.done.wait [#allocation3], 128  }
  0x12   :  { %88 = vsyncadd [#allocation3], 4294967168  ;;  %v21_v0 = vld [vmem:[#allocation2] sm:$0xff]  ;;  %s92_s18 = smov 1   ;;  %s93_s19 = smov [#allocation5]  }
  0x13   :  { %22 = vrot.lane.b32.xlu0 %v21_v0, %s92_s18  ;;  %s31_s20 = sshll.u32 %s93_s19, 4  ;;  %s32_s20 = int_to_ptr.vmem [resolvable:$true] %s31_s20 }
  0x14   :  { %s65_s21 = scalar_lea.vmem %s32_s20, 128  ;;  %p70_p9 = scmp.lt.s32.totalorder %s32_s20, %s32_s20 }
  0x15   :  { %p66_p8 = scmp.ne.s32.totalorder %s32_s20, %s65_s21  ;;  %p71_p10 = scmp.lt.s32.totalorder %s65_s21, %s65_s21 }
  0x17   :  { %p72_p11 = por %p71_p10, %p70_p9 }
  0x19   :  { %p73_p12 = pnand %p72_p11, %p66_p8 }
  0x85   :  { %v23_v1 = vpop.permute.xlu0 %22 }
  0x86   :  { %24 = vst [vmem:[#allocation5] sm:$0xff] %v23_v1 }
  0x87   :  { %76 = shalt.err (!%p73_p12)
}
  0x88   :  { %s77_s0 = scalar_lea.hbm %s129_s1, 128 }
  0x89   :  { %p78_p13 = scmp.ne.s32.totalorder %s129_s1, %s77_s0  ;;  %p81_p0 = scmp.lt.u32.totalorder %s77_s0, %s129_s1 }
  0x8b   :  { %p83_p1 = pnand %p81_p0, %p78_p13 }
  0x8d   :  { %86 = shalt.err (!%p83_p1)
}
  0x8e   :  { %34 = dma.vmem_to_hbm [thread:$0]  %s32_s20, 128, %s129_s1, [#allocation4]  }
  0x8f   :  { %89 = dma.done.wait [#allocation4], 128  }
  0x90   :  { %90 = vsyncadd [#allocation4], 4294967168 }
  0x91   :  { %38 = vsyncpa [#allocation3], 1 }
  0x92   :  { %39 = vsyncpa [#allocation4], 1 }

</bundles_post_ra>
